<compile_context>
chip_gen: v7x
topology: tpu7x:2x2x1
jax: 0.10.0
libtpu: 0.0.40
codegen_flags: <defaults>
</compile_context>

<pallas_src>
import jax
import jax.numpy as jnp
from jax.experimental import pallas as pl
from jax.experimental.pallas import tpu as pltpu

_EPS = 0.0  # GINEConv default (train_eps=False)


def _round_up(v, m):
    return (v + m - 1) // m * m


def _net3_kernel(x_ref, src_ref, dst_ref, ea_ref, w1_ref, wnn_ref, b_ref,
                 o_ref, agg_ref):
    i = pl.program_id(0)              # destination-node row tile (parallel)
    k = pl.program_id(1)              # edge tile (reduction, last)
    tm, f_out = o_ref.shape
    te = src_ref.shape[0]
    n_pad, f_x = x_ref.shape

    @pl.when(k == 0)
    def _init():
        agg_ref[...] = jnp.zeros_like(agg_ref)

    x_all = x_ref[...]                # [N_pad, F_X]  (gather source, full)
    b = b_ref[...]                    # [2, max(F_X, F_OUT)] packed biases

    # --- per-edge messages for this edge tile: relu(x[src] + edge_attr @ W1 + b1)
    eproj = jnp.dot(ea_ref[...], w1_ref[...],
                    preferred_element_type=jnp.float32) + b[0:1, :f_x]
    src = src_ref[...]                # [TE, 1] int32
    gather = (jax.lax.broadcasted_iota(jnp.int32, (te, n_pad), 1) == src)
    x_src = jnp.dot(gather.astype(jnp.float32), x_all,
                    preferred_element_type=jnp.float32)        # [TE, F_X]
    msg = jnp.maximum(x_src + eproj, 0.0)                      # [TE, F_X]

    # --- scatter-add (sum aggregation) into this node tile's accumulator
    dst = dst_ref[...]                # [1, TE] int32 (padded edges have dst=-1)
    row_ids = i * tm + jax.lax.broadcasted_iota(jnp.int32, (tm, te), 0)
    scatter = (row_ids == dst).astype(jnp.float32)             # [TM, TE]
    agg_ref[...] += jnp.dot(scatter, msg, preferred_element_type=jnp.float32)

    # --- finalize: ((1 + eps) * x_i + agg) @ Wnn + bnn
    @pl.when(k == pl.num_programs(1) - 1)
    def _finalize():
        row0 = pl.multiple_of(i * tm, tm)
        x_self = x_ref[pl.ds(row0, tm), :]                     # [TM, F_X]
        h = agg_ref[...] + (1.0 + _EPS) * x_self
        out = jnp.dot(h, wnn_ref[...],
                      preferred_element_type=jnp.float32) + b[1:2, :f_out]
        o_ref[...] = out.astype(o_ref.dtype)


def net3_forward(x, edge_index, edge_attr, params, *, tm=256, te=512):
    """x: [N,16] f32, edge_index: [2,E] int32, edge_attr: [E,8] f32."""
    w1, b1, wnn, bnn = params
    n, f_x = x.shape
    e, f_e = edge_attr.shape
    f_out = wnn.shape[1]

    # Tile sizes: row tile multiple of 8 (sublanes), edge tile multiple of 128 (lanes).
    tm = _round_up(max(8, min(tm, _round_up(n, 8))), 8)
    n_pad = _round_up(n, tm)
    te = _round_up(max(128, min(te, _round_up(e, 128))), 128)
    e_pad = _round_up(e, te)

    # --- padding / packing glue (index setup only) ---
    x_pad = jnp.zeros((n_pad, f_x), x.dtype).at[:n].set(x)
    src = jnp.zeros((e_pad, 1), jnp.int32).at[:e, 0].set(edge_index[0].astype(jnp.int32))
    dst = jnp.full((1, e_pad), -1, jnp.int32).at[0, :e].set(edge_index[1].astype(jnp.int32))
    ea_pad = jnp.zeros((e_pad, f_e), edge_attr.dtype).at[:e].set(edge_attr)
    bw = max(f_x, f_out)
    b_packed = (jnp.zeros((2, bw), jnp.float32)
                .at[0, :f_x].set(b1.astype(jnp.float32))
                .at[1, :f_out].set(bnn.astype(jnp.float32)))

    grid = (n_pad // tm, e_pad // te)

    grid_spec = pltpu.PrefetchScalarGridSpec(
        num_scalar_prefetch=0,
        grid=grid,
        in_specs=[
            pl.BlockSpec((n_pad, f_x), lambda i, k: (0, 0)),   # x (full, gather source)
            pl.BlockSpec((te, 1),      lambda i, k: (k, 0)),   # src node ids
            pl.BlockSpec((1, te),      lambda i, k: (0, k)),   # dst node ids
            pl.BlockSpec((te, f_e),    lambda i, k: (k, 0)),   # edge_attr
            pl.BlockSpec((f_e, f_x),   lambda i, k: (0, 0)),   # W1 (lin1)
            pl.BlockSpec((f_x, f_out), lambda i, k: (0, 0)),   # Wnn (GINE nn)
            pl.BlockSpec((2, bw),      lambda i, k: (0, 0)),   # packed biases
        ],
        out_specs=pl.BlockSpec((tm, f_out), lambda i, k: (i, 0)),
        scratch_shapes=[pltpu.VMEM((tm, f_x), jnp.float32)],
    )

    flops = (2 * grid[0] * e_pad * f_x * (n_pad + f_e)   # gather + edge proj
             + 2 * n_pad * e_pad * f_x                   # scatter accumulation
             + 2 * n_pad * f_x * f_out)                  # fused output matmul
    bytes_accessed = 4 * (n_pad * f_x
                          + grid[0] * e_pad * (f_e + 2)
                          + n_pad * f_out
                          + w1.size + wnn.size + b_packed.size)

    out = pl.pallas_call(
        _net3_kernel,
        out_shape=jax.ShapeDtypeStruct((n_pad, f_out), jnp.float32),
        grid_spec=grid_spec,
        compiler_params=pltpu.CompilerParams(
            dimension_semantics=("parallel", "arbitrary")),
        cost_estimate=pl.CostEstimate(
            flops=int(flops), transcendentals=0,
            bytes_accessed=int(bytes_accessed)),
    )(x_pad, src, dst, ea_pad,
      w1.astype(jnp.float32), wnn.astype(jnp.float32), b_packed)
    return out[:n]


def net3_reference(x, edge_index, edge_attr, params):
    """Pure-JAX reference of the PyTorch forward (PyG GINEConv defaults)."""
    w1, b1, wnn, bnn = params
    e = edge_attr @ w1 + b1
    src, dst = edge_index[0], edge_index[1]
    msg = jnp.maximum(x[src] + e, 0.0)
    agg = jnp.zeros_like(x).at[dst].add(msg)
    h = agg + (1.0 + _EPS) * x
    return h @ wnn + bnn


def init_params(key):
    """Deterministic init mimicking PyTorch Linear default U[-1/sqrt(fan_in), +]."""
    ks = jax.random.split(key, 2)

    def lin(k, fan_in, fan_out):
        kw, kb = jax.random.split(k)
        bound = 1.0 / jnp.sqrt(fan_in)
        w = jax.random.uniform(kw, (fan_in, fan_out), jnp.float32, -bound, bound)
        b = jax.random.uniform(kb, (fan_out,), jnp.float32, -bound, bound)
        return w, b

    w1, b1 = lin(ks[0], 8, 16)      # lin1: Linear(8, 16)
    wnn, bnn = lin(ks[1], 16, 32)   # GINEConv nn: Linear(16, 32)
    return (w1, b1, wnn, bnn)


if __name__ == "__main__":
    key = jax.random.PRNGKey(0)
    k_x, k_ei, k_ea, k_p = jax.random.split(key, 4)

    N, E = 24, 200                  # small demo graph
    x = jax.random.normal(k_x, (N, 16), jnp.float32)
    edge_index = jax.random.randint(k_ei, (2, E), 0, N, dtype=jnp.int32)
    edge_attr = jax.random.normal(k_ea, (E, 8), jnp.float32)
    params = init_params(k_p)

    # Small tiles so the demo exercises a 2 (node tiles) x 2 (edge tiles) grid.
    out = net3_forward(x, edge_index, edge_attr, params, tm=16, te=128)
    jax.block_until_ready(out)

    ref = net3_reference(x, edge_index, edge_attr, params)
    assert out.shape == (N, 32) and out.dtype == jnp.float32
    max_err = float(jnp.max(jnp.abs(out - ref)))
    assert max_err < 1e-3, f"mismatch vs reference: {max_err}"
    print("KERNEL_OK")
</pallas_src>

<mosaic_0001>
module attributes {stable_mosaic.version = 11 : i64} {
  func.func @_net3_kernel(%arg0: i32, %arg1: i32, %arg2: memref<32x16xf32, #tpu.memory_space<vmem>>, %arg3: memref<128x1xi32, #tpu.memory_space<vmem>>, %arg4: memref<1x128xi32, #tpu.memory_space<vmem>>, %arg5: memref<128x8xf32, #tpu.memory_space<vmem>>, %arg6: memref<8x16xf32, #tpu.memory_space<vmem>>, %arg7: memref<16x32xf32, #tpu.memory_space<vmem>>, %arg8: memref<2x32xf32, #tpu.memory_space<vmem>>, %arg9: memref<16x32xf32, #tpu.memory_space<vmem>>, %arg10: memref<16x16xf32, #tpu.memory_space<vmem>>) attributes {dimension_semantics = [#tpu.dimension_semantics<parallel>, #tpu.dimension_semantics<arbitrary>], iteration_bounds = array<i64: 2, 2>, scalar_prefetch = 0 : i64, scratch_operands = 1 : i64, tpu.core_type = #tpu.core_type<tc>, window_params = [{pipeline_mode = #tpu.pipeline_mode<synchronous>, transform_indices = @transform_0, window_bounds = array<i64: 32, 16>}, {transform_indices = @transform_1, window_bounds = array<i64: 128, 1>}, {transform_indices = @transform_2, window_bounds = array<i64: 1, 128>}, {transform_indices = @transform_3, window_bounds = array<i64: 128, 8>}, {pipeline_mode = #tpu.pipeline_mode<synchronous>, transform_indices = @transform_4, window_bounds = array<i64: 8, 16>}, {pipeline_mode = #tpu.pipeline_mode<synchronous>, transform_indices = @transform_5, window_bounds = array<i64: 16, 32>}, {pipeline_mode = #tpu.pipeline_mode<synchronous>, transform_indices = @transform_6, window_bounds = array<i64: 2, 32>}, {transform_indices = @transform_7, window_bounds = array<i64: 16, 32>}]} {
    %c0_i32 = arith.constant 0 : i32
    %0 = arith.cmpi eq, %arg1, %c0_i32 : i32
    %1 = arith.extui %0 : i1 to i32
    %c0_i32_0 = arith.constant 0 : i32
    %2 = arith.cmpi ne, %1, %c0_i32_0 : i32
    scf.if %2 {
      %cst_20 = arith.constant 0.000000e+00 : f32
      %37 = vector.broadcast %cst_20 : f32 to vector<16x16xf32>
      %c0_21 = arith.constant 0 : index
      %c0_22 = arith.constant 0 : index
      %38 = vector.load %arg10[%c0_21, %c0_22] : memref<16x16xf32, #tpu.memory_space<vmem>>, vector<16x16xf32>
      tpu.vector_store %arg10[%c0_21, %c0_22], %37 {strides = array<i32>} : memref<16x16xf32, #tpu.memory_space<vmem>>, vector<16x16xf32>,
    } else {
    }
    %c0 = arith.constant 0 : index
    %c0_1 = arith.constant 0 : index
    %3 = vector.load %arg2[%c0, %c0_1] : memref<32x16xf32, #tpu.memory_space<vmem>>, vector<32x16xf32>
    %c0_2 = arith.constant 0 : index
    %c0_3 = arith.constant 0 : index
    %4 = vector.load %arg8[%c0_2, %c0_3] : memref<2x32xf32, #tpu.memory_space<vmem>>, vector<2x32xf32>
    %c0_4 = arith.constant 0 : index
    %c0_5 = arith.constant 0 : index
    %5 = vector.load %arg5[%c0_4, %c0_5] : memref<128x8xf32, #tpu.memory_space<vmem>>, vector<128x8xf32>
    %c0_6 = arith.constant 0 : index
    %c0_7 = arith.constant 0 : index
    %6 = vector.load %arg6[%c0_6, %c0_7] : memref<8x16xf32, #tpu.memory_space<vmem>>, vector<8x16xf32>
    %cst = arith.constant dense<0.000000e+00> : vector<128x16xf32>
    %7 = tpu.matmul %5, %6, %cst {dimension_numbers = #tpu.dot_dimension_numbers<[1], [0], [0], [1], [0, 0, 1, 1], [], []>} : vector<128x8xf32>, vector<8x16xf32>, vector<128x16xf32> -> vector<128x16xf32>
    %8 = vector.extract_strided_slice %4 {offsets = [0, 0], sizes = [1, 16], strides = [1, 1]} : vector<2x32xf32> to vector<1x16xf32>
    %9 = vector.broadcast %8 : vector<1x16xf32> to vector<128x16xf32>
    %10 = arith.addf %7, %9 : vector<128x16xf32>
    %c0_8 = arith.constant 0 : index
    %c0_9 = arith.constant 0 : index
    %11 = vector.load %arg3[%c0_8, %c0_9] : memref<128x1xi32, #tpu.memory_space<vmem>>, vector<128x1xi32>
    %12 = tpu.iota {dimensions = array<i32: 1>} : vector<128x32xi32>
    %13 = vector.broadcast %11 : vector<128x1xi32> to vector<128x32xi32>
    %14 = arith.cmpi eq, %12, %13 : vector<128x32xi32>
    %15 = arith.extui %14 : vector<128x32xi1> to vector<128x32xi32>
    %16 = arith.sitofp %15 : vector<128x32xi32> to vector<128x32xf32>
    %cst_10 = arith.constant dense<0.000000e+00> : vector<128x16xf32>
    %17 = tpu.matmul %16, %3, %cst_10 {dimension_numbers = #tpu.dot_dimension_numbers<[1], [0], [0], [1], [0, 0, 1, 1], [], []>} : vector<128x32xf32>, vector<32x16xf32>, vector<128x16xf32> -> vector<128x16xf32>
    %18 = arith.addf %17, %10 : vector<128x16xf32>
    %cst_11 = arith.constant 0.000000e+00 : f32
    %19 = vector.broadcast %cst_11 : f32 to vector<128x16xf32>
    %20 = arith.maximumf %18, %19 : vector<128x16xf32>
    %c0_12 = arith.constant 0 : index
    %c0_13 = arith.constant 0 : index
    %21 = vector.load %arg4[%c0_12, %c0_13] : memref<1x128xi32, #tpu.memory_space<vmem>>, vector<1x128xi32>
    %c16_i32 = arith.constant 16 : i32
    %22 = arith.muli %arg0, %c16_i32 : i32
    %23 = tpu.iota {dimensions = array<i32: 0>} : vector<16x128xi32>
    %24 = vector.broadcast %22 : i32 to vector<16x128xi32>
    %25 = arith.addi %24, %23 : vector<16x128xi32>
    %26 = vector.broadcast %21 : vector<1x128xi32> to vector<16x128xi32>
    %27 = arith.cmpi eq, %25, %26 : vector<16x128xi32>
    %28 = arith.extui %27 : vector<16x128xi1> to vector<16x128xi32>
    %29 = arith.sitofp %28 : vector<16x128xi32> to vector<16x128xf32>
    %c0_14 = arith.constant 0 : index
    %c0_15 = arith.constant 0 : index
    %30 = vector.load %arg10[%c0_14, %c0_15] : memref<16x16xf32, #tpu.memory_space<vmem>>, vector<16x16xf32>
    %cst_16 = arith.constant dense<0.000000e+00> : vector<16x16xf32>
    %31 = tpu.matmul %29, %20, %cst_16 {dimension_numbers = #tpu.dot_dimension_numbers<[1], [0], [0], [1], [0, 0, 1, 1], [], []>} : vector<16x128xf32>, vector<128x16xf32>, vector<16x16xf32> -> vector<16x16xf32>
    %32 = arith.addf %30, %31 : vector<16x16xf32>
    %c0_17 = arith.constant 0 : index
    %c0_18 = arith.constant 0 : index
    %33 = vector.load %arg10[%c0_17, %c0_18] : memref<16x16xf32, #tpu.memory_space<vmem>>, vector<16x16xf32>
    tpu.vector_store %arg10[%c0_17, %c0_18], %32 {strides = array<i32>} : memref<16x16xf32, #tpu.memory_space<vmem>>, vector<16x16xf32>,
    %c1_i32 = arith.constant 1 : i32
    %34 = arith.cmpi eq, %arg1, %c1_i32 : i32
    %35 = arith.extui %34 : i1 to i32
    %c0_i32_19 = arith.constant 0 : i32
    %36 = arith.cmpi ne, %35, %c0_i32_19 : i32
    scf.if %36 {
      %c16_i32_20 = arith.constant 16 : i32
      %37 = arith.muli %arg0, %c16_i32_20 : i32
      %38 = tpu.assume_multiple %37, 16 : i32
      %39 = arith.index_cast %38 : i32 to index
      %c0_21 = arith.constant 0 : index
      %40 = vector.load %arg2[%39, %c0_21] : memref<32x16xf32, #tpu.memory_space<vmem>>, vector<16x16xf32>
      %c0_22 = arith.constant 0 : index
      %c0_23 = arith.constant 0 : index
      %41 = vector.load %arg10[%c0_22, %c0_23] : memref<16x16xf32, #tpu.memory_space<vmem>>, vector<16x16xf32>
      %cst_24 = arith.constant 1.000000e+00 : f32
      %42 = vector.broadcast %cst_24 : f32 to vector<16x16xf32>
      %43 = arith.mulf %42, %40 : vector<16x16xf32>
      %44 = arith.addf %41, %43 : vector<16x16xf32>
      %c0_25 = arith.constant 0 : index
      %c0_26 = arith.constant 0 : index
      %45 = vector.load %arg7[%c0_25, %c0_26] : memref<16x32xf32, #tpu.memory_space<vmem>>, vector<16x32xf32>
      %cst_27 = arith.constant dense<0.000000e+00> : vector<16x32xf32>
      %46 = tpu.matmul %44, %45, %cst_27 {dimension_numbers = #tpu.dot_dimension_numbers<[1], [0], [0], [1], [0, 0, 1, 1], [], []>} : vector<16x16xf32>, vector<16x32xf32>, vector<16x32xf32> -> vector<16x32xf32>
      %47 = vector.extract_strided_slice %4 {offsets = [1, 0], sizes = [1, 32], strides = [1, 1]} : vector<2x32xf32> to vector<1x32xf32>
      %48 = vector.broadcast %47 : vector<1x32xf32> to vector<16x32xf32>
      %49 = arith.addf %46, %48 : vector<16x32xf32>
      %c0_28 = arith.constant 0 : index
      %c0_29 = arith.constant 0 : index
      %50 = vector.load %arg9[%c0_28, %c0_29] : memref<16x32xf32, #tpu.memory_space<vmem>>, vector<16x32xf32>
      tpu.vector_store %arg9[%c0_28, %c0_29], %49 {strides = array<i32>} : memref<16x32xf32, #tpu.memory_space<vmem>>, vector<16x32xf32>,
    } else {
    }
    return
  }
  func.func @transform_0(%arg0: i32, %arg1: i32) -> (i32, i32) {
    %c0_i32 = arith.constant 0 : i32
    %c0_i32_0 = arith.constant 0 : i32
    %c0_i32_1 = arith.constant 0 : i32
    return %c0_i32, %c0_i32_0 : i32, i32
  }
  func.func @transform_1(%arg0: i32, %arg1: i32) -> (i32, i32) {
    %c0_i32 = arith.constant 0 : i32
    %c0_i32_0 = arith.constant 0 : i32
    return %arg1, %c0_i32 : i32, i32
  }
  func.func @transform_2(%arg0: i32, %arg1: i32) -> (i32, i32) {
    %c0_i32 = arith.constant 0 : i32
    %c0_i32_0 = arith.constant 0 : i32
    return %c0_i32, %arg1 : i32, i32
  }
  func.func @transform_3(%arg0: i32, %arg1: i32) -> (i32, i32) {
    %c0_i32 = arith.constant 0 : i32
    %c0_i32_0 = arith.constant 0 : i32
    return %arg1, %c0_i32 : i32, i32
  }
  func.func @transform_4(%arg0: i32, %arg1: i32) -> (i32, i32) {
    %c0_i32 = arith.constant 0 : i32
    %c0_i32_0 = arith.constant 0 : i32
    %c0_i32_1 = arith.constant 0 : i32
    return %c0_i32, %c0_i32_0 : i32, i32
  }
  func.func @transform_5(%arg0: i32, %arg1: i32) -> (i32, i32) {
    %c0_i32 = arith.constant 0 : i32
    %c0_i32_0 = arith.constant 0 : i32
    %c0_i32_1 = arith.constant 0 : i32
    return %c0_i32, %c0_i32_0 : i32, i32
  }
  func.func @transform_6(%arg0: i32, %arg1: i32) -> (i32, i32) {
    %c0_i32 = arith.constant 0 : i32
    %c0_i32_0 = arith.constant 0 : i32
    %c0_i32_1 = arith.constant 0 : i32
    return %c0_i32, %c0_i32_0 : i32, i32
  }
  func.func @transform_7(%arg0: i32, %arg1: i32) -> (i32, i32) {
    %c0_i32 = arith.constant 0 : i32
    %c0_i32_0 = arith.constant 0 : i32
    return %arg0, %c0_i32 : i32, i32
  }
}

</mosaic_0001>

<bundles_post_ra>
// kernel: tpu_custom_call.1
= control target key start
LH: loop header
LB: loop body
LE: loop exit
PB: predicated region body
PF: predicated region fallthrough
CT: control target
= control target key end

     0   :  { %12 = vsyncpa [#allocation4], 0  ;;  %s2065_s0 = inlined_call_operand.vmem [shape: f32[32,16], index: 0, kind: input, shape index: {}]   ;;  %s2066_s1 = inlined_call_operand.vmem [shape: s32[256,1], index: 1, kind: input, shape index: {}]   ;;  %s2067_s2 = inlined_call_operand.vmem [shape: s32[1,256], index: 2, kind: input, shape index: {}]   ;;  %s2068_s3 = inlined_call_operand.vmem [shape: f32[256,8], index: 3, kind: input, shape index: {}]   ;;  %s2069_s4 = inlined_call_operand.vmem [shape: f32[8,16], index: 4, kind: input, shape index: {}]   ;;  %s2070_s5 = inlined_call_operand.vmem [shape: f32[16,32], index: 5, kind: input, shape index: {}]   ;;  %s2071_s6 = inlined_call_operand.vmem [shape: f32[2,32], index: 6, kind: input, shape index: {}]   ;;  %s2072_s7 = inlined_call_operand.hbm [shape: f32[32,32], index: 7, kind: output, shape index: {}]  }
   0x1   :  { %14 = vsyncpa [#allocation4 + $0x1], 0  ;;  %s1720_s24 = smov 0   ;;  %s1722_s25 = smov 0  }
   0x2   :  { %s1724_s26 = smov 0   ;;  %s1726_s27 = smov 0  }
   0x3   :  { %s1728_s28 = smov 0   ;;  %s1730_s29 = smov 0  }
   0x4   :  { %s1732_s30 = smov 0   ;;  %s1734_s8 = smov 0  }
   0x5 LB: > { %2077 = sst [smem:[#allocation6_spill]] %s1663_s29  ;;  %s1189_s9 = sadd.s32 4294967295, %s1671_s8   ;;  %s1671_s8 = sphi %s1734_s8, %s20_s8   ;;  %s1667_s30 = sphi %s1732_s30, %s2087_s30   ;;  %s1663_s29 = sphi %s1730_s29, %s2086_s29   ;;  %s1659_s28 = sphi %s1728_s28, %s2085_s28   ;;  %s1655_s27 = sphi %s1726_s27, %s2084_s27   ;;  %s1651_s26 = sphi %s1724_s26, %s2090_s26   ;;  %s1647_s25 = sphi %s1722_s25, %s2089_s25   ;;  %s1643_s24 = sphi %s1720_s24, %s2088_s24  }
   0x6   : > { %2078 = sst [smem:[#allocation7_spill]] %s1667_s30  ;;  %s1190_s10 = sadd.s32 4294967294, %s1671_s8  }
   0x7   : > { %s29_s11 = sadd.s32 1, %s1663_s29  ;;  %s32_s12 = sadd.s32 1, %s1667_s30 }
   0x8   : > { %p30_p0 = scmp.ge.s32.totalorder %s29_s11, 2  ;;  %p211_p1 = scmp.ne.s32.totalorder %s1651_s26, %s1647_s25 }
   0x9   : > { %p212_p2 = scmp.eq.s32.totalorder %s1189_s9, 3  ;;  %p217_p4 = scmp.ne.s32.totalorder %s1647_s25, %s1643_s24 }
   0xa   : > { %s2092_s11 = smov (%p30_p0, %s29_s11), 0  ;;  %s2094_s12 = smov (!%p30_p0, %s32_s12), %s1667_s30 }
   0xb   : > { %2079 = sst [smem:[#allocation8_spill]] %s2092_s11  ;;  %p1769_p3 = por %p212_p2, %p211_p1 }
   0xc   : > { %p34_p5 = scmp.ge.s32.totalorder %s2094_s12, 2  ;;  %p218_p6 = scmp.eq.s32.totalorder %s1190_s10, 3 }
   0xd   : > { %p1193_p7 = scmp.ge.s32.totalorder %s1671_s8, 1  ;;  %p272_p8 = scmp.lt.s32.totalorder %s1671_s8, 5 }
   0xe   : > { %s2096_s12 = smov (%p34_p5, %s2094_s12), 0  ;;  %p1779_p9 = por %p218_p6, %p217_p4 }
   0xf   : > { %2081 = sst [smem:[#allocation9_spill]] %s2096_s12  ;;  %p273_p10 = pnand %p1193_p7, %p272_p8 }
  0x10   : > { %s198_s15 = ssub.s32 %s1667_s30, %s2096_s12  ;;  %s201_s16 = sadd.s32 1, %s1651_s26 }
  0x11   : > { %p199_p11 = scmp.eq.s32.totalorder %s198_s15, 0  ;;  %276 = sbr.rel (%p273_p10) target bundleno = 886 (0x376), region = 48 }
  0x12   : > { %s2075_s18 = sand.u32 (!%p273_p10), 1, %s1647_s25   ;;  %s1195_s19 = sshll.u32 (!%p273_p10), %s1655_s27, 4 }
  0x13   : > { %s1787_s17 = scalar_select %p199_p11, %s1651_s26, %s201_s16  }
  0x14   : > { %s1194_s20 = sshll.u32 (!%p273_p10), %s2075_s18, 4  ;;  %p313_p12 = scmp.lt.s32.totalorder (!%p273_p10), %s1195_s19, 31 }
  0x15   : > { %p318_p13 = scmp.lt.s32.totalorder (!%p273_p10), %s1655_s27, 1  ;;  %s1811_s29 = scalar_lea.vmem (!%p273_p10), [#allocation3], %s1194_s20 }
  0x16   : > { %p1199_p0 = scmp.ne.s32.totalorder (!%p273_p10), %s1655_s27, 0 }
  0x18   : > { %s2098_s19 = smov (!%p313_p12, %s1195_s19), 31  ;;  %331 = sbr.rel (%p1199_p0) target bundleno = 31 (0x1f), region = 52 }
  0x19   : > { %s1795_s21 = scalar_select %p318_p13, %s1655_s27, 1 }
  0x1a   : > { %s1196_s22 = sshll.u32 %s2098_s19, 3  ;;  %vm332_vm0 = vcmask (!%p1199_p0), 130048   ;;  %v1673_v0 = vmov (!%p1199_p0), 0.0  }
  0x1b   : > { %s1800_s10 = scalar_lea.vmem %s2066_s1, %s1196_s22  ;;  %s320_s12 = scalar_lea.vmem %s2067_s2, %s1795_s21  ;;  %333 = vst.msk [vmem:[#allocation2] sm:$0xff] (!%p1199_p0), %vm332_vm0, %v1673_v0  ;;  %334 = vst.msk [vmem:[#allocation2 + $0x8] sm:$0xff] (!%p1199_p0), %vm332_vm0, %v1673_v0 }
  0x1c   : > { %s1809_s18 = scalar_lea.vmem %s2068_s3, %s1196_s22 }
  0x1f PF: > { %v557_v1 = vld [vmem:[%s1800_s10 + $0x10] sm:$0xff]  ;;  %v555_v2 = vld [vmem:[%s1800_s10] sm:$0xff]  ;;  %v1674_v3 = vmov 0   ;;  %v558_v4 = vld [vmem:[%s1800_s10 + $0x18] sm:$0xff]  ;;  %vm361_vm1 = vcmask 64512   ;;  %v357_v41 = vlaneseq  ;;  %vm669_vm2 = vcmask 261120  }
  0x20   : > { %1576 = vset.pattern.permute.xlu1 %v1674_v3  ;;  %1575 = vset.pattern.permute.xlu0 %v1674_v3  ;;  %v556_v5 = vld [vmem:[%s1800_s10 + $0x8] sm:$0xff]  ;;  %v335_v7 = vld [vmem:[%s2065_s0] sm:$0xff]  ;;  %v337_v12 = vld [vmem:[%s2065_s0 + $0x10] sm:$0xff]  ;;  %v1675_v45 = vmov 0.0   ;;  %p1254_p1 = scmp.ne.s32.totalorder %s1655_s27, 1 }
  0x21   : > { %580 = vperm.xlu1 %1576, %v557_v1   ;;  %574 = vperm.xlu0 %1575, %v555_v2   ;;  %v560_v6 = vld [vmem:[%s1800_s10 + $0x28] sm:$0xff]  ;;  %v356_v10 = vld [vmem:[%s2069_s4] sm:$0xff]  ;;  %v338_v14 = vld [vmem:[%s2065_s0 + $0x18] sm:$0xff]  ;;  %v1878_v42 = vand.u32 127, %v357_v41 }
  0x22   : > { %v336_v8 = vld [vmem:[%s2065_s0 + $0x8] sm:$0xff]  ;;  %v340_v11 = vld [vmem:[%s1809_s18] sm:$0xff]  ;;  %1322 = vmatprep.subr.mxu1 %v356_v10  ;;  %v1426_v16 = vpack.c.bf16 %v338_v14, %v337_v12  ;;  %v342_v17 = vld [vmem:[%s1809_s18 + $0x10] sm:$0xff] }
  0x23   : > { %v1422_v9 = vpack.c.bf16 %v336_v8, %v335_v7  ;;  %v559_v13 = vld [vmem:[%s1800_s10 + $0x20] sm:$0xff]  ;;  %1324 = vmatprep.mubr.msk.f32.mxu1 %vm361_vm1, %v340_v11  ;;  %v341_v15 = vld [vmem:[%s1809_s18 + $0x8] sm:$0xff]  ;;  %1323 = vmatpush3.msra.mxu1 %v356_v10  ;;  %v343_v18 = vld [vmem:[%s1809_s18 + $0x18] sm:$0xff] }
  0x24   : > { %1325 = vmatmul.mubr.msk.f32.vlgmr.msra.gmra.mrb[0].mxu1 %vm361_vm1, %v341_v15  ;;  %v562_v19 = vld [vmem:[%s1800_s10 + $0x38] sm:$0xff]  ;;  %v561_v20 = vld [vmem:[%s1800_s10 + $0x30] sm:$0xff]  ;;  %v344_v21 = vld [vmem:[%s1809_s18 + $0x20] sm:$0xff] }
  0x25   : > { %583 = vperm.xlu1 %1576, %v558_v4   ;;  %577 = vperm.xlu0 %1575, %v556_v5   ;;  %v345_v22 = vld [vmem:[%s1809_s18 + $0x28] sm:$0xff]  ;;  %v563_v24 = vld [vmem:[%s1800_s10 + $0x40] sm:$0xff]  ;;  %v346_v25 = vld [vmem:[%s1809_s18 + $0x30] sm:$0xff] }
  0x26   : > { %1423 = vmatprep.subr.bf16.mxu0 %v1422_v9  ;;  %1327 = vmatprep.mubr.msk.f32.mxu1 %vm361_vm1, %v342_v17  ;;  %v564_v23 = vld [vmem:[%s1800_s10 + $0x48] sm:$0xff]  ;;  %v347_v26 = vld [vmem:[%s1809_s18 + $0x38] sm:$0xff]  ;;  %v565_v28 = vld [vmem:[%s1800_s10 + $0x50] sm:$0xff] }
  0x27   : > { %1425 = vmatpush3.bf16.msra.mxu0 %v1422_v9  ;;  %v566_v27 = vld [vmem:[%s1800_s10 + $0x58] sm:$0xff]  ;;  %v348_v29 = vld [vmem:[%s1809_s18 + $0x40] sm:$0xff]  ;;  %v349_v30 = vld [vmem:[%s1809_s18 + $0x48] sm:$0xff] }
  0x28   : > { %1427 = vmatprep.subr.bf16.mxu0 %v1426_v16  ;;  %1328 = vmatmul.mubr.msk.f32.gmra.mrb[2].mxu1 %vm361_vm1, %v343_v18  ;;  %v568_v31 = vld [vmem:[%s1800_s10 + $0x68] sm:$0xff]  ;;  %v567_v32 = vld [vmem:[%s1800_s10 + $0x60] sm:$0xff]  ;;  %v350_v33 = vld [vmem:[%s1809_s18 + $0x50] sm:$0xff] }
  0x29   : > { %589 = vperm.xlu1 %1576, %v560_v6   ;;  %586 = vperm.xlu0 %1575, %v559_v13   ;;  %v351_v34 = vld [vmem:[%s1809_s18 + $0x58] sm:$0xff]  ;;  %v569_v36 = vld [vmem:[%s1800_s10 + $0x70] sm:$0xff]  ;;  %v352_v37 = vld [vmem:[%s1809_s18 + $0x60] sm:$0xff] }
  0x2a   : > { %1330 = vmatprep.mubr.msk.f32.mxu1 %vm361_vm1, %v344_v21  ;;  %v570_v35 = vld [vmem:[%s1800_s10 + $0x78] sm:$0xff]  ;;  %v353_v38 = vld [vmem:[%s1809_s18 + $0x68] sm:$0xff]  ;;  %v354_v39 = vld [vmem:[%s1809_s18 + $0x70] sm:$0xff] }
  0x2b   : > { %1429 = vmatpush3.bf16.msra.mxu0 %v1426_v16  ;;  %v355_v40 = vld [vmem:[%s1809_s18 + $0x78] sm:$0xff]  ;;  %s1248_s18 = sshll.u32 %s1659_s28, 4 }
  0x2c   : > { %1331 = vmatmul.mubr.msk.f32.gmra.mrb[4].mxu1 %vm361_vm1, %v345_v22  ;;  %s983_s16 = scalar_lea.vmem (!%p1254_p1), %s2065_s0, %s1248_s18 }
  0x2d   : > { %595 = vperm.xlu1 %1576, %v562_v19   ;;  %592 = vperm.xlu0 %1575, %v561_v20  }
  0x2e   : > { %1333 = vmatprep.mubr.msk.f32.mxu1 %vm361_vm1, %v346_v25 }
  0x30   : > { %1334 = vmatmul.mubr.msk.f32.gmra.mrb[6].mxu1 %vm361_vm1, %v347_v26 }
  0x31   : > { %601 = vperm.xlu1 %1576, %v564_v23   ;;  %598 = vperm.xlu0 %1575, %v563_v24  }
  0x32   : > { %1336 = vmatprep.mubr.msk.f32.mxu1 %vm361_vm1, %v348_v29 }
  0x34   : > { %1337 = vmatmul.mubr.msk.f32.gmra.mrb[8].mxu1 %vm361_vm1, %v349_v30  ;;  %v884_v30 = vstv %s1248_s18 }
  0x35   : > { %607 = vperm.xlu1 %1576, %v566_v27   ;;  %604 = vperm.xlu0 %1575, %v565_v28   ;;  %v1925_v28 = vshrl.u32 %v357_v41, 7 }
  0x36   : > { %1339 = vmatprep.mubr.msk.f32.mxu1 %vm361_vm1, %v350_v33 }
  0x37   : > { %v883_v29 = vadd.s32 8, %v1925_v28 }
  0x38   : > { %1340 = vmatmul.mubr.msk.f32.gmra.mrb[10].mxu1 %vm361_vm1, %v351_v34  ;;  %v1676_v34 = vmov 1.0  }
  0x39   : > { %613 = vperm.xlu1 %1576, %v568_v31   ;;  %610 = vperm.xlu0 %1575, %v567_v32   ;;  %v885_v31 = vadd.s32 %v884_v30, %v1925_v28  ;;  %v1937_v32 = vld [vmem:[%s320_s12] ss:$0 sm:$0xff]  ;;  %v1939_v33 = vadd.s32 %v884_v30, %v883_v29 }
  0x3a   : > { %1342 = vmatprep.mubr.msk.f32.mxu1 %vm361_vm1, %v352_v37 }
  0x3c   : > { %1343 = vmatmul.mubr.msk.f32.gmra.mrb[12].mxu1 %vm361_vm1, %v353_v38 }
  0x3d   : > { %619 = vperm.xlu1 %1576, %v570_v35   ;;  %616 = vperm.xlu0 %1575, %v569_v36   ;;  %v359_v35 = vsub.s32 0, %v1925_v28  ;;  %v1949_v36 = vld [vmem:[%s2071_s6] sm:$0x3] }
  0x3e   : > { %1345 = vmatprep.mubr.msk.f32.mxu1 %vm361_vm1, %v354_v39 }
  0x3f   : > { %v1952_v37 = vrot.slane %v1949_v36, %v359_v35 }
  0x40   : > { %1346 = vmatmul.mubr.msk.f32.gmra.mrb[14].mxu1 %vm361_vm1, %v355_v40 }
  0xa0   : > { %v581_v43 = vpop.permute.xlu1 %580  ;;  %v575_v44 = vpop.permute.xlu0 %574 }
  0xa1   : > { %vm621_vm3 = vcmp.eq.s32.totalorder %v1878_v42, %v575_v44  ;;  %vm623_vm4 = vcmp.eq.s32.totalorder %v1878_v42, %v581_v43 }
  0xa2   : > { %v1216_v46 = vsel %vm621_vm3, 1.0, %v1675_v45  ;;  %v1218_v49 = vsel %vm623_vm4, 1.0, %v1675_v45  ;;  %vm891_vm4 = vcmp.eq.s32.totalorder %v885_v31, %v1937_v32 }
  0xa3   : > { %1356 = vmatprep.mubr.msk.f32.mxu0 %vm669_vm2, %v1216_v46  ;;  %1412 = vmatprep.mubr.msk.f32.mxu1 %vm891_vm4, %v1676_v34 }
  0xa4   : > { %v584_v47 = vpop.permute.xlu1 %583  ;;  %v578_v48 = vpop.permute.xlu0 %577 }
  0xa5   : > { %vm622_vm5 = vcmp.eq.s32.totalorder %v1878_v42, %v578_v48  ;;  %vm624_vm6 = vcmp.eq.s32.totalorder %v1878_v42, %v584_v47 }
  0xa6   : > { %v1217_v50 = vsel %vm622_vm5, 1.0, %v1675_v45  ;;  %v1219_v53 = vsel %vm624_vm6, 1.0, %v1675_v45  ;;  %vm892_vm5 = vcmp.eq.s32.totalorder %v1939_v33, %v1937_v32  ;;  %vm976_vm6 = vcmask 130048   ;;  %v990_v32 = vld [vmem:[%s2070_s5] sm:$0xff] (!%p1254_p1)  ;;  %v991_v33 = vld [vmem:[%s2070_s5 + $0x8] sm:$0xff] (!%p1254_p1) }
  0xa7   : > { %1357 = vmatmul.mubr.msk.f32.vlgmr.msra.gmra.mrb[0].mxu0 %vm669_vm2, %v1217_v50 }
  0xa8   : > { %v590_v51 = vpop.permute.xlu1 %589  ;;  %v587_v52 = vpop.permute.xlu0 %586  ;;  %1359 = vmatprep.mubr.msk.f32.mxu0 %vm669_vm2, %v1218_v49 }
  0xa9   : > { %vm625_vm7 = vcmp.eq.s32.totalorder %v1878_v42, %v587_v52  ;;  %vm626_vm8 = vcmp.eq.s32.totalorder %v1878_v42, %v590_v51 }
  0xaa   : > { %v1220_v54 = vsel %vm625_vm7, 1.0, %v1675_v45  ;;  %v1221_v57 = vsel %vm626_vm8, 1.0, %v1675_v45 }
  0xab   : > { %1360 = vmatmul.mubr.msk.f32.gmra.mrb[2].mxu0 %vm669_vm2, %v1219_v53 }
  0xac   : > { %v596_v55 = vpop.permute.xlu1 %595  ;;  %v593_v56 = vpop.permute.xlu0 %592  ;;  %1362 = vmatprep.mubr.msk.f32.mxu0 %vm669_vm2, %v1220_v54 }
  0xad   : > { %vm627_vm9 = vcmp.eq.s32.totalorder %v1878_v42, %v593_v56  ;;  %vm628_vm10 = vcmp.eq.s32.totalorder %v1878_v42, %v596_v55 }
  0xae   : > { %v1222_v58 = vsel %vm627_vm9, 1.0, %v1675_v45  ;;  %v1223_v61 = vsel %vm628_vm10, 1.0, %v1675_v45 }
  0xaf   : > { %1363 = vmatmul.mubr.msk.f32.gmra.mrb[4].mxu0 %vm669_vm2, %v1221_v57 }
  0xb0   : > { %v602_v59 = vpop.permute.xlu1 %601  ;;  %v599_v60 = vpop.permute.xlu0 %598  ;;  %1365 = vmatprep.mubr.msk.f32.mxu0 %vm669_vm2, %v1222_v58 }
  0xb1   : > { %vm629_vm11 = vcmp.eq.s32.totalorder %v1878_v42, %v599_v60  ;;  %vm630_vm12 = vcmp.eq.s32.totalorder %v1878_v42, %v602_v59 }
  0xb2   : > { %v1224_v62 = vsel %vm629_vm11, 1.0, %v1675_v45  ;;  %v1225_v1 = vsel %vm630_vm12, 1.0, %v1675_v45 }
  0xb3   : > { %1366 = vmatmul.mubr.msk.f32.gmra.mrb[6].mxu0 %vm669_vm2, %v1223_v61 }
  0xb4   : > { %v608_v63 = vpop.permute.xlu1 %607  ;;  %v605_v0 = vpop.permute.xlu0 %604  ;;  %1368 = vmatprep.mubr.msk.f32.mxu0 %vm669_vm2, %v1224_v62 }
  0xb5   : > { %vm631_vm13 = vcmp.eq.s32.totalorder %v1878_v42, %v605_v0  ;;  %vm632_vm14 = vcmp.eq.s32.totalorder %v1878_v42, %v608_v63 }
  0xb6   : > { %v1226_v2 = vsel %vm631_vm13, 1.0, %v1675_v45  ;;  %v1227_v5 = vsel %vm632_vm14, 1.0, %v1675_v45 }
  0xb7   : > { %1369 = vmatmul.mubr.msk.f32.gmra.mrb[8].mxu0 %vm669_vm2, %v1225_v1 }
  0xb8   : > { %v614_v3 = vpop.permute.xlu1 %613  ;;  %v611_v4 = vpop.permute.xlu0 %610  ;;  %1371 = vmatprep.mubr.msk.f32.mxu0 %vm669_vm2, %v1226_v2 }
  0xb9   : > { %vm633_vm15 = vcmp.eq.s32.totalorder %v1878_v42, %v611_v4  ;;  %vm634_vm0 = vcmp.eq.s32.totalorder %v1878_v42, %v614_v3 }
  0xba   : > { %v1228_v6 = vsel %vm633_vm15, 1.0, %v1675_v45  ;;  %v1229_v9 = vsel %vm634_vm0, 1.0, %v1675_v45 }
  0xbb   : > { %1372 = vmatmul.mubr.msk.f32.gmra.mrb[10].mxu0 %vm669_vm2, %v1227_v5 }
  0xbc   : > { %v620_v7 = vpop.permute.xlu1 %619  ;;  %v617_v8 = vpop.permute.xlu0 %616  ;;  %1374 = vmatprep.mubr.msk.f32.mxu0 %vm669_vm2, %v1228_v6 }
  0xbd   : > { %vm635_vm1 = vcmp.eq.s32.totalorder %v1878_v42, %v617_v8  ;;  %vm636_vm3 = vcmp.eq.s32.totalorder %v1878_v42, %v620_v7 }
  0xbe   : > { %v1230_v10 = vsel %vm635_vm1, 1.0, %v1675_v45  ;;  %v1231_v11 = vsel %vm636_vm3, 1.0, %v1675_v45 }
  0xbf   : > { %1375 = vmatmul.mubr.msk.f32.gmra.mrb[12].mxu0 %vm669_vm2, %v1229_v9 }
  0xc0   : > { %1377 = vmatprep.mubr.msk.f32.mxu0 %vm669_vm2, %v1230_v10 }
  0xc3   : > { %1378 = vmatmul.mubr.msk.f32.gmra.mrb[14].mxu0 %vm669_vm2, %v1231_v11 }
  0xf7   : > { %v1326_v12 = vpop.f32.mrb[0].mxu1 }
  0xf8   : > { %v476_v13 = vpop.f32.mrb[1].mxu1  ;;  %v482_v38 = vadd.f32 %v1326_v12, %v1952_v37 }
  0xf9   : > { %v477_v39 = vadd.f32 %v476_v13, %v1952_v37 }
  0xfb   : > { %v1329_v14 = vpop.f32.mrb[2].mxu1 }
  0xfc   : > { %v486_v15 = vpop.f32.mrb[3].mxu1  ;;  %v492_v42 = vadd.f32 %v1329_v14, %v1952_v37 }
  0xfd   : > { %v487_v45 = vadd.f32 %v486_v15, %v1952_v37 }
  0xff   : > { %v1332_v16 = vpop.f32.mrb[4].mxu1 }
 0x100   : > { %v496_v17 = vpop.f32.mrb[5].mxu1  ;;  %v502_v50 = vadd.f32 %v1332_v16, %v1952_v37 }
 0x101   : > { %v497_v54 = vadd.f32 %v496_v17, %v1952_v37 }
 0x103   : > { %v1335_v18 = vpop.f32.mrb[6].mxu1 }
 0x104   : > { %v506_v19 = vpop.f32.mrb[7].mxu1  ;;  %v512_v59 = vadd.f32 %v1335_v18, %v1952_v37 }
 0x105   : > { %v507_v63 = vadd.f32 %v506_v19, %v1952_v37 }
 0x107   : > { %v1338_v20 = vpop.f32.mrb[8].mxu1 }
 0x108   : > { %v516_v21 = vpop.f32.mrb[9].mxu1  ;;  %v522_v4 = vadd.f32 %v1338_v20, %v1952_v37 }
 0x109   : > { %v517_v8 = vadd.f32 %v516_v21, %v1952_v37 }
 0x10b   : > { %v1912_v22 = vpop.f32.mrb[10].mxu1 }
 0x10c   : > { %v1914_v23 = vpop.f32.mrb[11].mxu1  ;;  %v532_v13 = vadd.f32 %v1912_v22, %v1952_v37 }
 0x10d   : > { %v527_v17 = vadd.f32 %v1914_v23, %v1952_v37 }
 0x10f   : > { %v1916_v24 = vpop.f32.mrb[12].mxu1 }
 0x110   : > { %v1918_v25 = vpop.f32.mrb[13].mxu1  ;;  %v542_v29 = vadd.f32 %v1916_v24, %v1952_v37 }
 0x111   : > { %v537_v22 = vadd.f32 %v1918_v25, %v1952_v37 }
 0x113   : > { %v1920_v26 = vpop.f32.mrb[14].mxu1 }
 0x114   : > { %v1922_v27 = vpop.f32.mrb[15].mxu1 }
 0x115   : > { %v547_v24 = vadd.f32 %v1922_v27, %v1952_v37  ;;  %v898_v27 = vld [vmem:[#allocation2 + $0x8] sm:$0xff] }
 0x17a   : > { %v1358_v40 = vpop.f32.mrb[0].mxu0 }
 0x17b   : > { %v790_v41 = vadd.f32 %v1358_v40, %v482_v38  ;;  %v784_v43 = vpop.f32.mrb[1].mxu0 }
 0x17c   : > { %v785_v44 = vadd.f32 %v784_v43, %v477_v39 }
 0x17d   : > { %v864_v46 = vmax.f32 %v790_v41, 0.0  ;;  %v552_v41 = vadd.f32 %v1920_v26, %v1952_v37  ;;  %v897_v37 = vld [vmem:[#allocation2] sm:$0xff] }
 0x17e   : > { %v863_v47 = vmax.f32 %v785_v44, 0.0  ;;  %v1361_v48 = vpop.f32.mrb[2].mxu0 }
 0x17f   : > { %v800_v49 = vadd.f32 %v1361_v48, %v492_v42  ;;  %v794_v51 = vpop.f32.mrb[3].mxu0 }
 0x180   : > { %v1430_v52 = vpack.c.bf16 %v864_v46, %v863_v47  ;;  %v795_v53 = vadd.f32 %v794_v51, %v487_v45 }
 0x181   : > { %v866_v55 = vmax.f32 %v800_v49, 0.0 }
 0x182   : > { %v865_v56 = vmax.f32 %v795_v53, 0.0  ;;  %v1364_v57 = vpop.f32.mrb[4].mxu0  ;;  %1431 = vmatprep.subr.bf16.mxu1 %v1430_v52 }
 0x183   : > { %v810_v58 = vadd.f32 %v1364_v57, %v502_v50  ;;  %v804_v60 = vpop.f32.mrb[5].mxu0  ;;  %1433 = vmatpush3.bf16.msra.mxu1 %v1430_v52  ;;  %v1462_v57 = vpack.c.bf16 (!%p1254_p1), %v991_v33, %v990_v32 }
 0x184   : > { %v1434_v61 = vpack.c.bf16 %v866_v55, %v865_v56  ;;  %v805_v62 = vadd.f32 %v804_v60, %v497_v54 }
 0x185   : > { %v868_v0 = vmax.f32 %v810_v58, 0.0  ;;  %v984_v58 = vld [vmem:[%s983_s16] sm:$0xff] (!%p1254_p1)  ;;  %1463 = vmatprep.subr.bf16.mxu0 (!%p1254_p1), %v1462_v57 }
 0x186   : > { %v867_v1 = vmax.f32 %v805_v62, 0.0  ;;  %v1367_v2 = vpop.f32.mrb[6].mxu0  ;;  %1435 = vmatprep.subr.bf16.mxu1 %v1434_v61  ;;  %1465 = vmatpush3.bf16.msra.mxu0 (!%p1254_p1), %v1462_v57 }
 0x187   : > { %v820_v3 = vadd.f32 %v1367_v2, %v512_v59  ;;  %v814_v5 = vpop.f32.mrb[7].mxu0  ;;  %1437 = vmatpush3.bf16.msra.mxu1 %v1434_v61  ;;  %v985_v59 = vld [vmem:[%s983_s16 + $0x8] sm:$0xff] (!%p1254_p1) }
 0x188   : > { %v1438_v6 = vpack.c.bf16 %v868_v0, %v867_v1  ;;  %v815_v7 = vadd.f32 %v814_v5, %v507_v63  ;;  %v994_v63 = vsub.s32 (!%p1254_p1), 1, %v1925_v28 }
 0x189   : > { %v870_v9 = vmax.f32 %v820_v3, 0.0 }
 0x18a   : > { %v869_v10 = vmax.f32 %v815_v7, 0.0  ;;  %v1370_v11 = vpop.f32.mrb[8].mxu0  ;;  %1439 = vmatprep.subr.bf16.mxu1 %v1438_v6  ;;  %v995_v0 = vrot.slane (!%p1254_p1), %v1949_v36, %v994_v63 }
 0x18b   : > { %v830_v12 = vadd.f32 %v1370_v11, %v522_v4  ;;  %v824_v14 = vpop.f32.mrb[9].mxu0  ;;  %1441 = vmatpush3.bf16.msra.mxu1 %v1438_v6 }
 0x18c   : > { %v1442_v15 = vpack.c.bf16 %v870_v9, %v869_v10  ;;  %v825_v16 = vadd.f32 %v824_v14, %v517_v8 }
 0x18d   : > { %v872_v18 = vmax.f32 %v830_v12, 0.0 }
 0x18e   : > { %v871_v19 = vmax.f32 %v825_v16, 0.0  ;;  %v1373_v20 = vpop.f32.mrb[10].mxu0  ;;  %1443 = vmatprep.subr.bf16.mxu1 %v1442_v15 }
 0x18f   : > { %v840_v21 = vadd.f32 %v1373_v20, %v532_v13  ;;  %v834_v30 = vpop.f32.mrb[11].mxu0  ;;  %1445 = vmatpush3.bf16.msra.mxu1 %v1442_v15 }
 0x190   : > { %v1446_v31 = vpack.c.bf16 %v872_v18, %v871_v19  ;;  %v835_v35 = vadd.f32 %v834_v30, %v527_v17 }
 0x191   : > { %v874_v38 = vmax.f32 %v840_v21, 0.0 }
 0x192   : > { %v873_v39 = vmax.f32 %v835_v35, 0.0  ;;  %v1376_v40 = vpop.f32.mrb[12].mxu0  ;;  %1447 = vmatprep.subr.bf16.mxu1 %v1446_v31 }
 0x193   : > { %v850_v23 = vadd.f32 %v1376_v40, %v542_v29  ;;  %v844_v42 = vpop.f32.mrb[13].mxu0  ;;  %1449 = vmatpush3.bf16.msra.mxu1 %v1446_v31 }
 0x194   : > { %v1450_v43 = vpack.c.bf16 %v874_v38, %v873_v39  ;;  %v845_v44 = vadd.f32 %v844_v42, %v537_v22 }
 0x195   : > { %v876_v45 = vmax.f32 %v850_v23, 0.0 }
 0x196   : > { %v875_v46 = vmax.f32 %v845_v44, 0.0  ;;  %v1379_v47 = vpop.f32.mrb[14].mxu0  ;;  %1451 = vmatprep.subr.bf16.mxu1 %v1450_v43 }
 0x197   : > { %v860_v25 = vadd.f32 %v1379_v47, %v552_v41  ;;  %v854_v48 = vpop.f32.mrb[15].mxu0  ;;  %1453 = vmatpush3.bf16.msra.mxu1 %v1450_v43 }
 0x198   : > { %v1454_v49 = vpack.c.bf16 %v876_v45, %v875_v46  ;;  %v855_v50 = vadd.f32 %v854_v48, %v547_v24 }
 0x199   : > { %v878_v51 = vmax.f32 %v860_v25, 0.0 }
 0x19a   : > { %v877_v52 = vmax.f32 %v855_v50, 0.0  ;;  %1455 = vmatprep.subr.bf16.mxu1 %v1454_v49 }
 0x19b   : > { %1457 = vmatpush3.bf16.msra.mxu1 %v1454_v49 }
 0x19c   : > { %v1458_v26 = vpack.c.bf16 %v878_v51, %v877_v52 }
 0x19e   : > { %1459 = vmatprep.subr.bf16.mxu1 %v1458_v26 }
 0x19f   : > { %1461 = vmatpush3.bf16.msra.mxu1 %v1458_v26 }
 0x1a2   : > { %1413 = vmatmul.mubr.msk.f32.vlgmr.msra.gmra.mrb[16].mxu1 %vm892_vm5, %v1676_v34 }
 0x273   : > { %982 = sbr.rel (%p1254_p1) target bundleno = 860 (0x35c), region = 56 }
 0x275   : > { %v1414_v53 = vpop.f32.mrb[16].mxu1 }
 0x276   : > { %v975_v54 = vadd.f32 %v1414_v53, %v898_v27  ;;  %v965_v55 = vpop.f32.mrb[17].mxu1 }
 0x277   : > { %v974_v56 = vadd.f32 %v965_v55, %v897_v37 }
 0x278   : > { %978 = vst.msk [vmem:[#allocation2 + $0x8] sm:$0xff] %vm976_vm6, %v975_v54 }
 0x279   : > { %977 = vst.msk [vmem:[#allocation2] sm:$0xff] %vm976_vm6, %v974_v56 }
 0x27f   : > { %v987_v60 = vld [vmem:[#allocation2 + $0x8] sm:$0xff] }
 0x280   : > { %v986_v34 = vld [vmem:[#allocation2] sm:$0xff]  ;;  %v989_v62 = vadd.f32 %v987_v60, %v985_v59 }
 0x281   : > { %v988_v61 = vadd.f32 %v986_v34, %v984_v58 }
 0x283   : > { %1419 = vmatprep.mubr.msk.f32.mxu0 %vm976_vm6, %v988_v61 }
 0x284   : > { %1420 = vmatmul.mubr.msk.f32.vlgmr.msra.gmra.mrb[0].mxu0 %vm976_vm6, %v989_v62 }
 0x357   : > { %v1421_v1 = vpop.f32.mrb[0].mxu0 }
 0x358   : > { %v1074_v2 = vadd.f32 %v1421_v1, %v995_v0  ;;  %v1068_v3 = vpop.f32.mrb[1].mxu0 }
 0x359   : > { %v1069_v4 = vadd.f32 %v1068_v3, %v995_v0 }
 0x35a   : > { %1078 = vst.msk [vmem:[%s1811_s29 + $0x8] sm:$0xff] %vm669_vm2, %v1074_v2 }
 0x35b   : > { %1077 = vst.msk [vmem:[%s1811_s29] sm:$0xff] %vm669_vm2, %v1069_v4 }
 0x35c PF: > { %s1262_s27 = sshll.u32 %s1659_s28, 8  ;;  %s1093_s11 = sshll.u32 %s1811_s29, 4  ;;  %s2009_s11 = int_to_ptr.vmem [resolvable:$true] %s1093_s11 }
 0x35d   : > { %s2006_s10 = scalar_lea.hbm %s2072_s7, %s1262_s27  ;;  %s2083_s19 = sand.u32 1, %s1647_s25  }
 0x35e   : > { %s2013_s20 = scalar_lea.sflag [#allocation4], %s2083_s19  ;;  %s1577_s12 = scalar_lea.vmem %s2009_s11, 256 }
 0x35f   : > { %p1578_p2 = scmp.ne.s32.totalorder %s2009_s11, %s1577_s12  ;;  %s1677_s28 = smov [#allocation3]  }
 0x360   : > { %s1581_s21 = sshll.u32 %s1677_s28, 4  ;;  %s1582_s21 = int_to_ptr.vmem [resolvable:$false] %s1581_s21 }
 0x361   : > { %p1579_p4 = pnand %p1578_p2, %p1769_p3  ;;  %s1583_s22 = scalar_lea.vmem %s1582_s21, 512 }
 0x362   : > { %p1584_p6 = scmp.lt.s32.totalorder %s2009_s11, %s1582_s21  ;;  %p1585_p7 = scmp.lt.s32.totalorder %s1583_s22, %s1577_s12 }
 0x363   : > { %p1580_p5 = pneg %p1579_p4 }
 0x364   : > { %p1586_p8 = por %p1585_p7, %p1584_p6 }
 0x366   : > { %p1587_p10 = pnand %p1586_p8, %p1580_p5 }
 0x368   : > { %1590 = shalt.err (!%p1587_p10)
}
 0x369   : > { %s1591_s29 = scalar_lea.hbm %s2006_s10, 256  ;;  %s1595_s15 = scalar_lea.hbm %s2072_s7, 512 }
 0x36a   : > { %p1592_p11 = scmp.ne.s32.totalorder %s2006_s10, %s1591_s29  ;;  %p1596_p0 = scmp.lt.u32.totalorder %s2006_s10, %s2072_s7 }
 0x36b   : > { %p1597_p1 = scmp.lt.u32.totalorder %s1595_s15, %s1591_s29  ;;  %p1599_p4 = scmp.lt.u32.totalorder %s1591_s29, %s2006_s10 }
 0x36c   : > { %p1593_p12 = pnand %p1592_p11, %p1769_p3 }
 0x36d   : > { %p1598_p2 = por %p1597_p1, %p1596_p0 }
 0x36e   : > { %p1594_p13 = pneg %p1593_p12 }
 0x36f   : > { %p1600_p5 = por %p1599_p4, %p1598_p2 }
 0x371   : > { %p1601_p6 = pnand %p1600_p5, %p1594_p13 }
 0x373   : > { %1604 = shalt.err (!%p1601_p6)
}
 0x374   : > { %s1678_s30 = smov 128   ;;  %s1679_s18 = smov 8  }
 0x375   : > { %1498 = dma.vmem_to_hbm [thread:$0]  (%p1769_p3), %s2009_s11, 256, %s2006_s10, %s2013_s20, %s1678_s30, %s1678_s30, %s1679_s18  }
 0x376 PF: > { %p1504_p7 = scmp.ge.s32.totalorder %s1671_s8, 2  ;;  %s1108_s19 = sand.u32 1, %s1643_s24  }
 0x377   : > { %s1109_s12 = scalar_lea.sflag [#allocation4], %s1108_s19 }
 0x378   : > { %p1501_p8 = pnand %p1504_p7, %p1779_p9 }
 0x37a   : > { %1638 = dma.done.wait (!%p1501_p8), %s1109_s12, 256  }
 0x37b   : > { %1640 = vsyncadd (!%p1501_p8), %s1109_s12, 4294967040  ;;  %s20_s8 = sadd.s32 1, %s1671_s8   ;;  %s2084_s27 = sld [smem:[#allocation6_spill]] }
 0x37c   : > { %p17_p10 = scmp.ge.s32.totalorder %s20_s8, 6   ;;  %s2085_s28 = sld [smem:[#allocation7_spill]] }
 0x37d   : > { %s2086_s29 = sld [smem:[#allocation8_spill]]  ;;  %s2087_s30 = sld [smem:[#allocation9_spill]] }
 0x37e   : > { %s2088_s24 = smov %s1647_s25  ;;  %s2089_s25 = smov %s1651_s26 }
 0x37f   : > { %s2090_s26 = smov %s1787_s17  ;;  %19 = sbr.rel (!%p17_p10) target bundleno = 5 (0x5), region = 98 }
 0x386   :  { %1114 = vsyncpa [#allocation4], 1 }
 0x387   :  { %1116 = vsyncpa [#allocation4 + $0x1], 1 }

</bundles_post_ra>
